<compile_context>
chip_gen: v7x
topology: tpu7x:2x2x1
jax: 0.10.0
libtpu: 0.0.40
codegen_flags: <defaults>
</compile_context>

<pallas_src>
import functools
import math

import jax
import jax.numpy as jnp
from jax.experimental import pallas as pl
from jax.experimental.pallas import tpu as pltpu


def _pick_tile(n, target):
    """Largest multiple-of-8 tile <= target that evenly divides n (else full n)."""
    if n <= target or n % 8 != 0:
        return n
    t = target - (target % 8)
    while n % t != 0:
        t -= 8
    return t


# ----------------------------------------------------------------------------
# Fused path: conv-as-matmul + GroupNorm entirely in VMEM (one HBM write).
#   y      = x @ w + b                         (bf16 inputs, f32 accumulation)
#   stats  : per-group mean / E[x^2] via (1, Cout) @ (Cout, G) matmuls
#   out    = y * scale_c + shift_c             (group->channel via (1,G)@(G,Cout))
# ----------------------------------------------------------------------------
def _conv_gn_fused_kernel(x_ref, w_ref, b_ref, gmat_ref, gmat_t_ref,
                          gamma_ref, beta_ref, o_ref, *, eps, inv_p):
    x = x_ref[0]                                                   # (P, K) bf16
    y = (jnp.dot(x, w_ref[...], preferred_element_type=jnp.float32)
         + b_ref[...])                                             # (P, Cout) f32

    # Channel sums (sublane reduce), then channel->group reduce on the MXU.
    s = jnp.sum(y, axis=0, keepdims=True)                          # (1, Cout)
    ss = jnp.sum(y * y, axis=0, keepdims=True)                     # (1, Cout)
    mean_g = jnp.dot(s, gmat_ref[...], preferred_element_type=jnp.float32) * inv_p
    ex2_g = jnp.dot(ss, gmat_ref[...], preferred_element_type=jnp.float32) * inv_p
    var_g = jnp.maximum(ex2_g - mean_g * mean_g, 0.0)              # (1, G)
    rstd_g = jax.lax.rsqrt(var_g + eps)

    # group->channel broadcast (no repeat / gather): (1, G) @ (G, Cout).
    mean_c = jnp.dot(mean_g, gmat_t_ref[...], preferred_element_type=jnp.float32)
    rstd_c = jnp.dot(rstd_g, gmat_t_ref[...], preferred_element_type=jnp.float32)
    scale = gamma_ref[...] * rstd_c                                # (1, Cout)
    shift = beta_ref[...] - mean_c * scale
    o_ref[0] = y * scale + shift


# ----------------------------------------------------------------------------
# Streamed fallback, Kernel A: conv matmul + accumulated GroupNorm statistics
# ----------------------------------------------------------------------------
def _conv_stats_kernel(x_ref, w_ref, b_ref, gmat_ref, y_ref, stats_ref):
    x = x_ref[0]                                                   # (TP, K) bf16
    y = (jnp.dot(x, w_ref[...], preferred_element_type=jnp.float32)
         + b_ref[...])                                             # (TP, Cout) f32
    y_ref[0] = y

    s = jnp.sum(y, axis=0, keepdims=True)                          # (1, Cout)
    ss = jnp.sum(y * y, axis=0, keepdims=True)                     # (1, Cout)
    part = jnp.dot(jnp.concatenate([s, ss], axis=0), gmat_ref[...],
                   preferred_element_type=jnp.float32)             # (2, G)

    @pl.when(pl.program_id(1) == 0)
    def _():
        stats_ref[0] = part

    @pl.when(pl.program_id(1) > 0)
    def _():
        stats_ref[0] = stats_ref[0] + part


# ----------------------------------------------------------------------------
# Streamed fallback, Kernel B: lane-dense per-channel affine (folded GroupNorm)
# ----------------------------------------------------------------------------
def _gn_apply_kernel(y_ref, scale_ref, shift_ref, o_ref):
    o_ref[0] = y_ref[0] * scale_ref[0] + shift_ref[0]


def conv_groupnorm(patches, w, b, gamma, beta, *, num_groups, eps=1e-5,
                   row_tile=512, fused_vmem_budget=4 << 20):
    """patches: [B, P, K]; w: [K, Cout]; b/gamma/beta: [1, Cout] -> [B, P, Cout]."""
    B, P, K = patches.shape
    cout = w.shape[1]
    cg = cout // num_groups

    # Group-indicator matrix: gmat[c, g] = 1 if channel c belongs to group g.
    gmat = (jnp.arange(cout)[:, None] // cg
            == jnp.arange(num_groups)[None, :]).astype(jnp.float32)

    x16 = patches.astype(jnp.bfloat16)
    w16 = w.astype(jnp.bfloat16)

    # Rough per-step VMEM footprint of the fused path (x tile + y slab, double-buffered).
    fused_bytes = P * (K * 2 + cout * 4) * 2
    if fused_bytes <= fused_vmem_budget:
        kern = functools.partial(_conv_gn_fused_kernel, eps=eps, inv_p=1.0 / P)
        return pl.pallas_call(
            kern,
            out_shape=jax.ShapeDtypeStruct((B, P, cout), jnp.float32),
            grid=(B,),
            in_specs=[
                pl.BlockSpec((1, P, K), lambda i: (i, 0, 0)),
                pl.BlockSpec((K, cout), lambda i: (0, 0)),            # resident weights
                pl.BlockSpec((1, cout), lambda i: (0, 0)),
                pl.BlockSpec((cout, num_groups), lambda i: (0, 0)),
                pl.BlockSpec((num_groups, cout), lambda i: (0, 0)),
                pl.BlockSpec((1, cout), lambda i: (0, 0)),
                pl.BlockSpec((1, cout), lambda i: (0, 0)),
            ],
            out_specs=pl.BlockSpec((1, P, cout), lambda i: (i, 0, 0)),
            compiler_params=pltpu.CompilerParams(
                dimension_semantics=("parallel",)),
        )(x16, w16, b, gmat, gmat.T, gamma, beta)

    # ---------------- streamed two-kernel fallback (large P) ----------------
    TP = _pick_tile(P, row_tile)
    nP = P // TP

    y, stats = pl.pallas_call(
        _conv_stats_kernel,
        out_shape=(jax.ShapeDtypeStruct((B, P, cout), jnp.float32),
                   jax.ShapeDtypeStruct((B, 2, num_groups), jnp.float32)),
        grid=(B, nP),
        in_specs=[
            pl.BlockSpec((1, TP, K), lambda i, p: (i, p, 0)),
            pl.BlockSpec((K, cout), lambda i, p: (0, 0)),
            pl.BlockSpec((1, cout), lambda i, p: (0, 0)),
            pl.BlockSpec((cout, num_groups), lambda i, p: (0, 0)),
        ],
        out_specs=(
            pl.BlockSpec((1, TP, cout), lambda i, p: (i, p, 0)),
            pl.BlockSpec((1, 2, num_groups), lambda i, p: (i, 0, 0)),  # accumulator
        ),
        compiler_params=pltpu.CompilerParams(
            dimension_semantics=("parallel", "arbitrary")),
    )(x16, w16, b, gmat)

    # Finalize statistics (tiny, plain JAX): fold mean/rstd/gamma/beta into a
    # per-(batch, channel) affine.
    mean_g = stats[:, 0, :] / P                                    # (B, G)
    var_g = jnp.maximum(stats[:, 1, :] / P - mean_g * mean_g, 0.0)
    rstd_g = jax.lax.rsqrt(var_g + eps)
    mean_c = jnp.repeat(mean_g, cg, axis=1)                        # (B, Cout)
    rstd_c = jnp.repeat(rstd_g, cg, axis=1)
    scale = (gamma * rstd_c)[:, None, :]                           # (B, 1, Cout)
    shift = (beta - mean_c * (gamma * rstd_c))[:, None, :]         # (B, 1, Cout)

    return pl.pallas_call(
        _gn_apply_kernel,
        out_shape=jax.ShapeDtypeStruct((B, P, cout), jnp.float32),
        grid=(B, nP),
        in_specs=[
            pl.BlockSpec((1, TP, cout), lambda i, p: (i, p, 0)),
            pl.BlockSpec((1, 1, cout), lambda i, p: (i, 0, 0)),
            pl.BlockSpec((1, 1, cout), lambda i, p: (i, 0, 0)),
        ],
        out_specs=pl.BlockSpec((1, TP, cout), lambda i, p: (i, p, 0)),
        compiler_params=pltpu.CompilerParams(
            dimension_semantics=("parallel", "parallel")),
    )(y, scale, shift)


# ----------------------------------------------------------------------------
# Detection head: all decoder layers folded into one (M = L*B*NQ, H) slab.
#   outputs_class = class_embed(hs)
#   tmp = bbox_embed(hs); tmp += inverse_sigmoid(reference padded to 4 lanes)
#   outputs_coord = sigmoid(tmp)
# ----------------------------------------------------------------------------
def _head_kernel(hs_ref, ref_ref, cw_ref, cb_ref,
                 w1_ref, b1_ref, w2_ref, b2_ref, w3_ref, b3_ref,
                 logits_ref, boxes_ref):
    x = hs_ref[...]                                                # (TM, H) bf16
    logits_ref[...] = (jnp.dot(x, cw_ref[...], preferred_element_type=jnp.float32)
                       + cb_ref[...])
    # bbox MLP: 3 layers, ReLU on the first two (bf16 MXU inputs, f32 accumulation)
    h = jnp.maximum(jnp.dot(x, w1_ref[...], preferred_element_type=jnp.float32)
                    + b1_ref[...], 0.0)
    h = jnp.maximum(jnp.dot(h.astype(jnp.bfloat16), w2_ref[...],
                            preferred_element_type=jnp.float32) + b2_ref[...], 0.0)
    tmp = (jnp.dot(h.astype(jnp.bfloat16), w3_ref[...],
                   preferred_element_type=jnp.float32) + b3_ref[...])      # (TM, 4)
    # inverse_sigmoid(reference) with eps clamping; reference pre-padded with 0.5 on
    # the (w, h) lanes so the add is a single lane-dense op (inverse_sigmoid(0.5)==0).
    eps = 1e-5
    r = jnp.clip(ref_ref[...], 0.0, 1.0)                           # (TM, 4)
    inv = jnp.log(jnp.maximum(r, eps)) - jnp.log(jnp.maximum(1.0 - r, eps))
    v = tmp + inv
    boxes_ref[...] = 1.0 / (1.0 + jnp.exp(-v))


def detection_head(hs_tokens, ref4, cls_w, cls_b,
                   bb_w1, bb_b1, bb_w2, bb_b2, bb_w3, bb_b3, *, row_tile=256):
    """hs_tokens: [M, H]; ref4: [M, 4] -> (logits [M, C], boxes [M, 4])."""
    M, Hd = hs_tokens.shape
    C = cls_w.shape[1]
    TM = _pick_tile(M, row_tile)
    nM = M // TM

    x16 = hs_tokens.astype(jnp.bfloat16)
    cw16 = cls_w.astype(jnp.bfloat16)
    w116 = bb_w1.astype(jnp.bfloat16)
    w216 = bb_w2.astype(jnp.bfloat16)
    w316 = bb_w3.astype(jnp.bfloat16)

    return pl.pallas_call(
        _head_kernel,
        out_shape=(jax.ShapeDtypeStruct((M, C), jnp.float32),
                   jax.ShapeDtypeStruct((M, 4), jnp.float32)),
        grid=(nM,),
        in_specs=[
            pl.BlockSpec((TM, Hd), lambda m: (m, 0)),
            pl.BlockSpec((TM, 4), lambda m: (m, 0)),
            pl.BlockSpec((Hd, C), lambda m: (0, 0)),
            pl.BlockSpec((1, C), lambda m: (0, 0)),
            pl.BlockSpec((Hd, Hd), lambda m: (0, 0)),
            pl.BlockSpec((1, Hd), lambda m: (0, 0)),
            pl.BlockSpec((Hd, Hd), lambda m: (0, 0)),
            pl.BlockSpec((1, Hd), lambda m: (0, 0)),
            pl.BlockSpec((Hd, 4), lambda m: (0, 0)),
            pl.BlockSpec((1, 4), lambda m: (0, 0)),
        ],
        out_specs=(
            pl.BlockSpec((TM, C), lambda m: (m, 0)),
            pl.BlockSpec((TM, 4), lambda m: (m, 0)),
        ),
        compiler_params=pltpu.CompilerParams(dimension_semantics=("parallel",)),
    )(x16, ref4, cw16, cls_b, w116, bb_b1, w216, bb_b2, w316, bb_b3)


# ----------------------------------------------------------------------------
# Plain-JAX glue: im2col for the two input_proj variants (NCHW -> [B, P, K])
# ----------------------------------------------------------------------------
def im2col_1x1(x_nchw):
    B, C, H, W = x_nchw.shape
    return jnp.transpose(x_nchw, (0, 2, 3, 1)).reshape(B, H * W, C)


def im2col_3x3_s2_p1(x_nchw):
    B, C, H, W = x_nchw.shape
    Ho, Wo = (H + 1) // 2, (W + 1) // 2
    xp = jnp.pad(x_nchw, ((0, 0), (0, 0), (1, 1), (1, 1)))
    cols = []
    for dy in range(3):
        for dx in range(3):
            cols.append(xp[:, :, dy:dy + 2 * Ho:2, dx:dx + 2 * Wo:2])  # [B,C,Ho,Wo]
    patches = jnp.stack(cols, axis=2)                 # [B, C, 9, Ho, Wo]
    patches = patches.reshape(B, C * 9, Ho * Wo)
    return jnp.transpose(patches, (0, 2, 1)), Ho, Wo  # [B, Ho*Wo, C*9]


# ----------------------------------------------------------------------------
# Deterministic parameter construction + full forward (small shapes)
# ----------------------------------------------------------------------------
def main():
    # Config (small, consistent with the module's constructor)
    B = 2                     # batch
    CIN = 4                   # backbone output channels
    H = W = 16                # backbone feature-map spatial
    HID = 32                  # transformer.d_model
    NQ = 8                    # num_queries
    NC = 8                    # num_classes
    NG = 4                    # num_group_norm
    L = 2                     # transformer.decoder.num_layers (num_pred, not two_stage)
    prior_prob = 0.01
    bias_value = -math.log((1 - prior_prob) / prior_prob)

    key = jax.random.PRNGKey(0)
    ks = iter(jax.random.split(key, 32))

    # input_proj[0]: Conv2d(CIN, HID, k=1) + GroupNorm(NG, HID)   (xavier weight, zero bias)
    w_p0 = jax.random.normal(next(ks), (CIN, HID), jnp.float32) * math.sqrt(2.0 / (CIN + HID))
    b_p0 = jnp.zeros((1, HID), jnp.float32)
    g_p0 = 1.0 + 0.1 * jax.random.normal(next(ks), (1, HID), jnp.float32)
    be_p0 = 0.1 * jax.random.normal(next(ks), (1, HID), jnp.float32)

    # input_proj[1]: Conv2d(CIN, HID, k=3, s=2, p=1) + GroupNorm(NG, HID)
    fan = CIN * 9 + HID
    w_p1 = jax.random.normal(next(ks), (CIN * 9, HID), jnp.float32) * math.sqrt(2.0 / fan)
    b_p1 = jnp.zeros((1, HID), jnp.float32)
    g_p1 = 1.0 + 0.1 * jax.random.normal(next(ks), (1, HID), jnp.float32)
    be_p1 = 0.1 * jax.random.normal(next(ks), (1, HID), jnp.float32)

    # class_embed: Linear(HID, NC), bias = ones * bias_value  (seq_output=False branch)
    cls_w = jax.random.normal(next(ks), (HID, NC), jnp.float32) * (1.0 / math.sqrt(HID))
    cls_b = jnp.full((1, NC), bias_value, jnp.float32)

    # bbox_embed: MLP(HID, HID, 4, 3); last-layer weight=0, bias=[0,0,-2,-2]
    bb_w1 = jax.random.normal(next(ks), (HID, HID), jnp.float32) * (1.0 / math.sqrt(HID))
    bb_b1 = 0.01 * jax.random.normal(next(ks), (1, HID), jnp.float32)
    bb_w2 = jax.random.normal(next(ks), (HID, HID), jnp.float32) * (1.0 / math.sqrt(HID))
    bb_b2 = 0.01 * jax.random.normal(next(ks), (1, HID), jnp.float32)
    bb_w3 = jnp.zeros((HID, 4), jnp.float32)
    bb_b3 = jnp.array([[0.0, 0.0, -2.0, -2.0]], jnp.float32)

    # Synthetic backbone output (stub): one feature level [B, CIN, H, W] (NCHW)
    feat0 = jax.random.normal(next(ks), (B, CIN, H, W), jnp.float32)

    # ---- input_proj (Pallas kernels: fused conv matmul + GroupNorm) ----
    p0 = im2col_1x1(feat0)                                          # [B, 256, 4]
    src0_flat = conv_groupnorm(p0, w_p0, b_p0, g_p0, be_p0, num_groups=NG)
    src0 = jnp.transpose(src0_flat.reshape(B, H, W, HID), (0, 3, 1, 2))   # NCHW [B,32,16,16]

    p1, Ho, Wo = im2col_3x3_s2_p1(feat0)                            # [B, 64, 36]
    src1_flat = conv_groupnorm(p1, w_p1, b_p1, g_p1, be_p1, num_groups=NG)
    src1 = jnp.transpose(src1_flat.reshape(B, Ho, Wo, HID), (0, 3, 1, 2))  # NCHW [B,32,8,8]

    srcs = [src0, src1]
    masks = [jnp.zeros((B, H, W), bool), jnp.zeros((B, Ho, Wo), bool)]  # stub masks

    # ---- transformer outputs (stub, deterministic) ----
    hs = jax.random.normal(next(ks), (L, B, NQ, HID), jnp.float32)
    init_reference = jax.nn.sigmoid(jax.random.normal(next(ks), (B, NQ, 2), jnp.float32))
    inter_references = jax.nn.sigmoid(jax.random.normal(next(ks), (L, B, NQ, 2), jnp.float32))

    # reference for lvl 0 is init_reference, lvl>0 is inter_references[lvl-1]
    refs = jnp.concatenate([init_reference[None], inter_references[:L - 1]], axis=0)

    # Fold decoder layers into the matmul M dimension (shared heads across layers).
    M = L * B * NQ
    hs_tokens = hs.reshape(M, HID)
    ref2 = refs.reshape(M, 2)
    # Pad reference to 4 lanes with 0.5 so inverse_sigmoid(pad) == 0 (lane-dense add).
    ref4 = jnp.concatenate([ref2, jnp.full((M, 2), 0.5, jnp.float32)], axis=1)

    # ---- detection head (Pallas kernel, single slab over all layers) ----
    logits, boxes = detection_head(hs_tokens, ref4, cls_w, cls_b,
                                   bb_w1, bb_b1, bb_w2, bb_b2, bb_w3, bb_b3)
    outputs_class = logits.reshape(L, B, NQ, NC)
    outputs_coord = boxes.reshape(L, B, NQ, 4)

    out = {
        "pred_logits": outputs_class[-1],
        "pred_boxes": outputs_coord[-1],
        "aux_outputs": [
            {"pred_logits": outputs_class[i], "pred_boxes": outputs_coord[i]}
            for i in range(L - 1)
        ],
    }

    jax.block_until_ready((srcs, masks, out))
    assert out["pred_logits"].shape == (B, NQ, NC)
    assert out["pred_boxes"].shape == (B, NQ, 4)
    assert srcs[0].shape == (B, HID, H, W) and srcs[1].shape == (B, HID, Ho, Wo)
    assert bool(jnp.all(jnp.isfinite(out["pred_boxes"])))
    assert bool(jnp.all(jnp.isfinite(srcs[0]))) and bool(jnp.all(jnp.isfinite(srcs[1])))
    print("KERNEL_OK")


if __name__ == "__main__":
    main()
</pallas_src>

<mosaic_0001>
module attributes {stable_mosaic.version = 11 : i64} {
  func.func @_conv_gn_fused_kernel(%arg0: i32, %arg1: memref<1x256x4xbf16, #tpu.memory_space<vmem>>, %arg2: memref<4x32xbf16, #tpu.memory_space<vmem>>, %arg3: memref<1x32xf32, #tpu.memory_space<vmem>>, %arg4: memref<32x4xf32, #tpu.memory_space<vmem>>, %arg5: memref<4x32xf32, #tpu.memory_space<vmem>>, %arg6: memref<1x32xf32, #tpu.memory_space<vmem>>, %arg7: memref<1x32xf32, #tpu.memory_space<vmem>>, %arg8: memref<1x256x32xf32, #tpu.memory_space<vmem>>) attributes {dimension_semantics = [#tpu.dimension_semantics<parallel>], iteration_bounds = array<i64: 2>, scalar_prefetch = 0 : i64, scratch_operands = 0 : i64, tpu.core_type = #tpu.core_type<tc>, window_params = [{transform_indices = @transform_0, window_bounds = array<i64: 1, 256, 4>}, {pipeline_mode = #tpu.pipeline_mode<synchronous>, transform_indices = @transform_1, window_bounds = array<i64: 4, 32>}, {pipeline_mode = #tpu.pipeline_mode<synchronous>, transform_indices = @transform_2, window_bounds = array<i64: 1, 32>}, {pipeline_mode = #tpu.pipeline_mode<synchronous>, transform_indices = @transform_3, window_bounds = array<i64: 32, 4>}, {pipeline_mode = #tpu.pipeline_mode<synchronous>, transform_indices = @transform_4, window_bounds = array<i64: 4, 32>}, {pipeline_mode = #tpu.pipeline_mode<synchronous>, transform_indices = @transform_5, window_bounds = array<i64: 1, 32>}, {pipeline_mode = #tpu.pipeline_mode<synchronous>, transform_indices = @transform_6, window_bounds = array<i64: 1, 32>}, {transform_indices = @transform_7, window_bounds = array<i64: 1, 256, 32>}]} {
    %c0 = arith.constant 0 : index
    %c0_0 = arith.constant 0 : index
    %c0_1 = arith.constant 0 : index
    %0 = vector.load %arg1[%c0, %c0_0, %c0_1] : memref<1x256x4xbf16, #tpu.memory_space<vmem>>, vector<1x256x4xbf16>
    %1 = vector.shape_cast %0 : vector<1x256x4xbf16> to vector<256x4xbf16>
    %c0_2 = arith.constant 0 : index
    %c0_3 = arith.constant 0 : index
    %2 = vector.load %arg2[%c0_2, %c0_3] : memref<4x32xbf16, #tpu.memory_space<vmem>>, vector<4x32xbf16>
    %cst = arith.constant dense<0.000000e+00> : vector<256x32xf32>
    %3 = tpu.matmul %1, %2, %cst {dimension_numbers = #tpu.dot_dimension_numbers<[1], [0], [0], [1], [0, 0, 1, 1], [], []>} : vector<256x4xbf16>, vector<4x32xbf16>, vector<256x32xf32> -> vector<256x32xf32>
    %c0_4 = arith.constant 0 : index
    %c0_5 = arith.constant 0 : index
    %4 = vector.load %arg3[%c0_4, %c0_5] : memref<1x32xf32, #tpu.memory_space<vmem>>, vector<1x32xf32>
    %5 = vector.broadcast %4 : vector<1x32xf32> to vector<256x32xf32>
    %6 = arith.addf %3, %5 : vector<256x32xf32>
    %cst_6 = arith.constant dense<0.000000e+00> : vector<32xf32>
    %7 = vector.multi_reduction <add>, %6, %cst_6 [0] : vector<256x32xf32> to vector<32xf32>
    %8 = vector.shape_cast %7 : vector<32xf32> to vector<1x32xf32>
    %9 = arith.mulf %6, %6 : vector<256x32xf32>
    %cst_7 = arith.constant dense<0.000000e+00> : vector<32xf32>
    %10 = vector.multi_reduction <add>, %9, %cst_7 [0] : vector<256x32xf32> to vector<32xf32>
    %11 = vector.shape_cast %10 : vector<32xf32> to vector<1x32xf32>
    %c0_8 = arith.constant 0 : index
    %c0_9 = arith.constant 0 : index
    %12 = vector.load %arg4[%c0_8, %c0_9] : memref<32x4xf32, #tpu.memory_space<vmem>>, vector<32x4xf32>
    %cst_10 = arith.constant dense<0.000000e+00> : vector<1x4xf32>
    %13 = tpu.matmul %8, %12, %cst_10 {dimension_numbers = #tpu.dot_dimension_numbers<[1], [0], [0], [1], [0, 0, 1, 1], [], []>} : vector<1x32xf32>, vector<32x4xf32>, vector<1x4xf32> -> vector<1x4xf32>
    %cst_11 = arith.constant 3.906250e-03 : f32
    %14 = vector.broadcast %cst_11 : f32 to vector<1x4xf32>
    %15 = arith.mulf %13, %14 : vector<1x4xf32>
    %c0_12 = arith.constant 0 : index
    %c0_13 = arith.constant 0 : index
    %16 = vector.load %arg4[%c0_12, %c0_13] : memref<32x4xf32, #tpu.memory_space<vmem>>, vector<32x4xf32>
    %cst_14 = arith.constant dense<0.000000e+00> : vector<1x4xf32>
    %17 = tpu.matmul %11, %16, %cst_14 {dimension_numbers = #tpu.dot_dimension_numbers<[1], [0], [0], [1], [0, 0, 1, 1], [], []>} : vector<1x32xf32>, vector<32x4xf32>, vector<1x4xf32> -> vector<1x4xf32>
    %cst_15 = arith.constant 3.906250e-03 : f32
    %18 = vector.broadcast %cst_15 : f32 to vector<1x4xf32>
    %19 = arith.mulf %17, %18 : vector<1x4xf32>
    %20 = arith.mulf %15, %15 : vector<1x4xf32>
    %21 = arith.subf %19, %20 : vector<1x4xf32>
    %cst_16 = arith.constant 0.000000e+00 : f32
    %22 = vector.broadcast %cst_16 : f32 to vector<1x4xf32>
    %23 = arith.maximumf %21, %22 : vector<1x4xf32>
    %cst_17 = arith.constant 9.99999974E-6 : f32
    %24 = vector.broadcast %cst_17 : f32 to vector<1x4xf32>
    %25 = arith.addf %23, %24 : vector<1x4xf32>
    %26 = math.rsqrt %25 : vector<1x4xf32>
    %c0_18 = arith.constant 0 : index
    %c0_19 = arith.constant 0 : index
    %27 = vector.load %arg5[%c0_18, %c0_19] : memref<4x32xf32, #tpu.memory_space<vmem>>, vector<4x32xf32>
    %cst_20 = arith.constant dense<0.000000e+00> : vector<1x32xf32>
    %28 = tpu.matmul %15, %27, %cst_20 {dimension_numbers = #tpu.dot_dimension_numbers<[1], [0], [0], [1], [0, 0, 1, 1], [], []>} : vector<1x4xf32>, vector<4x32xf32>, vector<1x32xf32> -> vector<1x32xf32>
    %c0_21 = arith.constant 0 : index
    %c0_22 = arith.constant 0 : index
    %29 = vector.load %arg5[%c0_21, %c0_22] : memref<4x32xf32, #tpu.memory_space<vmem>>, vector<4x32xf32>
    %cst_23 = arith.constant dense<0.000000e+00> : vector<1x32xf32>
    %30 = tpu.matmul %26, %29, %cst_23 {dimension_numbers = #tpu.dot_dimension_numbers<[1], [0], [0], [1], [0, 0, 1, 1], [], []>} : vector<1x4xf32>, vector<4x32xf32>, vector<1x32xf32> -> vector<1x32xf32>
    %c0_24 = arith.constant 0 : index
    %c0_25 = arith.constant 0 : index
    %31 = vector.load %arg6[%c0_24, %c0_25] : memref<1x32xf32, #tpu.memory_space<vmem>>, vector<1x32xf32>
    %32 = arith.mulf %31, %30 : vector<1x32xf32>
    %c0_26 = arith.constant 0 : index
    %c0_27 = arith.constant 0 : index
    %33 = vector.load %arg7[%c0_26, %c0_27] : memref<1x32xf32, #tpu.memory_space<vmem>>, vector<1x32xf32>
    %34 = arith.mulf %28, %32 : vector<1x32xf32>
    %35 = arith.subf %33, %34 : vector<1x32xf32>
    %36 = vector.broadcast %32 : vector<1x32xf32> to vector<256x32xf32>
    %37 = arith.mulf %6, %36 : vector<256x32xf32>
    %38 = vector.broadcast %35 : vector<1x32xf32> to vector<256x32xf32>
    %39 = arith.addf %37, %38 : vector<256x32xf32>
    %c0_28 = arith.constant 0 : index
    %c0_29 = arith.constant 0 : index
    %c0_30 = arith.constant 0 : index
    %40 = vector.load %arg8[%c0_28, %c0_29, %c0_30] : memref<1x256x32xf32, #tpu.memory_space<vmem>>, vector<1x256x32xf32>
    %41 = vector.shape_cast %40 : vector<1x256x32xf32> to vector<256x32xf32>
    %42 = vector.shape_cast %39 : vector<256x32xf32> to vector<1x256x32xf32>
    tpu.vector_store %arg8[%c0_28, %c0_29, %c0_30], %42 {strides = array<i32>} : memref<1x256x32xf32, #tpu.memory_space<vmem>>, vector<1x256x32xf32>,
    return
  }
  func.func @transform_0(%arg0: i32) -> (i32, i32, i32) {
    %c0_i32 = arith.constant 0 : i32
    %c0_i32_0 = arith.constant 0 : i32
    %c0_i32_1 = arith.constant 0 : i32
    return %arg0, %c0_i32, %c0_i32_0 : i32, i32, i32
  }
  func.func @transform_1(%arg0: i32) -> (i32, i32) {
    %c0_i32 = arith.constant 0 : i32
    %c0_i32_0 = arith.constant 0 : i32
    %c0_i32_1 = arith.constant 0 : i32
    return %c0_i32, %c0_i32_0 : i32, i32
  }
  func.func @transform_2(%arg0: i32) -> (i32, i32) {
    %c0_i32 = arith.constant 0 : i32
    %c0_i32_0 = arith.constant 0 : i32
    %c0_i32_1 = arith.constant 0 : i32
    return %c0_i32, %c0_i32_0 : i32, i32
  }
  func.func @transform_3(%arg0: i32) -> (i32, i32) {
    %c0_i32 = arith.constant 0 : i32
    %c0_i32_0 = arith.constant 0 : i32
    %c0_i32_1 = arith.constant 0 : i32
    return %c0_i32, %c0_i32_0 : i32, i32
  }
  func.func @transform_4(%arg0: i32) -> (i32, i32) {
    %c0_i32 = arith.constant 0 : i32
    %c0_i32_0 = arith.constant 0 : i32
    %c0_i32_1 = arith.constant 0 : i32
    return %c0_i32, %c0_i32_0 : i32, i32
  }
  func.func @transform_5(%arg0: i32) -> (i32, i32) {
    %c0_i32 = arith.constant 0 : i32
    %c0_i32_0 = arith.constant 0 : i32
    %c0_i32_1 = arith.constant 0 : i32
    return %c0_i32, %c0_i32_0 : i32, i32
  }
  func.func @transform_6(%arg0: i32) -> (i32, i32) {
    %c0_i32 = arith.constant 0 : i32
    %c0_i32_0 = arith.constant 0 : i32
    %c0_i32_1 = arith.constant 0 : i32
    return %c0_i32, %c0_i32_0 : i32, i32
  }
  func.func @transform_7(%arg0: i32) -> (i32, i32, i32) {
    %c0_i32 = arith.constant 0 : i32
    %c0_i32_0 = arith.constant 0 : i32
    %c0_i32_1 = arith.constant 0 : i32
    return %arg0, %c0_i32, %c0_i32_0 : i32, i32, i32
  }
}

</mosaic_0001>

<bundles_post_ra>
// kernel: tpu_custom_call.1
= control target key start
LH: loop header
LB: loop body
LE: loop exit
PB: predicated region body
PF: predicated region fallthrough
CT: control target
= control target key end

     0   :  { %s1506_s24 = smov 0   ;;  %s1994_s0 = inlined_call_operand.vmem [shape: bf16[2,256,4], index: 0, kind: input, shape index: {}]   ;;  %s1995_s1 = inlined_call_operand.vmem [shape: bf16[4,32], index: 1, kind: input, shape index: {}]   ;;  %s1996_s2 = inlined_call_operand.vmem [shape: f32[1,32], index: 2, kind: input, shape index: {}]   ;;  %s1997_s3 = inlined_call_operand.vmem [shape: f32[32,4], index: 3, kind: input, shape index: {}]   ;;  %s1998_s4 = inlined_call_operand.vmem [shape: f32[4,32], index: 4, kind: input, shape index: {}]   ;;  %s1999_s5 = inlined_call_operand.vmem [shape: f32[1,32], index: 5, kind: input, shape index: {}]   ;;  %s2000_s6 = inlined_call_operand.vmem [shape: f32[1,32], index: 6, kind: input, shape index: {}]   ;;  %s2001_s7 = inlined_call_operand.vmem [shape: f32[2,256,32], index: 7, kind: output, shape index: {}]  }
   0x1 LB: > { %s1261_s25 = sadd.s32 4294967295, %s1461_s24   ;;  %p1265_p0 = scmp.ge.s32.totalorder %s1461_s24, 1  ;;  %s1461_s24 = sphi %s1506_s24, %s17_s24  }
   0x2   : > { %p237_p1 = scmp.lt.s32.totalorder %s1461_s24, 3 }
   0x4   : > { %p238_p2 = pnand %p1265_p0, %p237_p1 }
   0x5   : > { %v312_v0 = vld [vmem:[%s1995_s1] sm:$0x3] (!%p238_p2)  ;;  %vm449_vm0 = vcmask (!%p238_p2), 1041408   ;;  %p269_p3 = scmp.lt.s32.totalorder (!%p238_p2), %s1261_s25, 1  ;;  %vm400_vm1 = vcmask (!%p238_p2), 31744   ;;  %v786_v19 = vld [vmem:[%s1997_s3 + $0x8] sm:$0xff] (!%p238_p2) }
   0x6   : > { %241 = sbr.rel (%p238_p2) target bundleno = 793 (0x319), region = 48  ;;  %1424 = vmatprep.subr.msk.bf16.mxu0 (!%p238_p2), %vm449_vm0, %v312_v0  ;;  %v451_v1 = vsel (!%p238_p2), %vm449_vm0, %v312_v0, 0  ;;  %1425 = vmatprep.subr.msk.bf16.mxu1 (!%p238_p2), %vm449_vm0, %v312_v0  ;;  %v785_v18 = vld [vmem:[%s1997_s3] sm:$0xff] (!%p238_p2)  ;;  %v1463_v21 = vmov (!%p238_p2), 0.0|0.0   ;;  %v787_v22 = vld [vmem:[%s1997_s3 + $0x10] sm:$0xff] (!%p238_p2)  ;;  %v788_v23 = vld [vmem:[%s1997_s3 + $0x18] sm:$0xff] (!%p238_p2) }
   0x7   : > { %1345 = vmatpush3.bf16.msra.mxu0 (!%p238_p2), %v451_v1  ;;  %1423 = vmatpush3.bf16.msra.mxu1 (!%p238_p2), %v451_v1  ;;  %v1563_v20 = vpack.c.bf16 (!%p238_p2), %v786_v19, %v785_v18  ;;  %v1574_v24 = vpack.c.bf16 (!%p238_p2), %v788_v23, %v787_v22  ;;  %vm1464_vm2 = vmmov (!%p238_p2), 0   ;;  %v1465_v25 = vmov (!%p238_p2), 0.0   ;;  %v1583_v26 = vld [vmem:[%s1996_s2] ss:$0 sm:$0xff] (!%p238_p2) }
   0x8   : > { %1410 = vmatprep.subr.bf16.mxu1 (!%p238_p2), %v1463_v21  ;;  %vm614_vm3 = vcmask (!%p238_p2), 261120   ;;  %vm946_vm4 = vcmask (!%p238_p2), 1043456  }
   0xd   : > { %s2003_s25 = smov (!%p269_p3, %s1261_s25), 1 }
   0xe   : > { %s1311_s28 = sshll.u32 %s2003_s25, 7  ;;  %s1312_s27 = sshll.u32 %s2003_s25, 8 }
   0xf   : > { %s1523_s8 = scalar_lea.vmem %s1994_s0, %s1311_s28  ;;  %s1921_s29 = scalar_lea.vmem %s2001_s7, %s1312_s27 }
  0x10   : > { %v1437_v2 = vld [vmem:[%s1523_s8] sm:$0xff]   ;;  %v1438_v3 = vld [vmem:[%s1523_s8 + $0x8] sm:$0xff]   ;;  %v1439_v4 = vld [vmem:[%s1523_s8 + $0x10] sm:$0xff]  }
  0x11   : > { %1346 = vmatprep.mubr.msk.bf16.mxu0 %vm400_vm1, %v1437_v2  ;;  %v1440_v5 = vld [vmem:[%s1523_s8 + $0x18] sm:$0xff]   ;;  %v1441_v6 = vld [vmem:[%s1523_s8 + $0x20] sm:$0xff]   ;;  %v1450_v8 = vld [vmem:[%s1523_s8 + $0x68] sm:$0xff]  }
  0x12   : > { %1347 = vmatmul.mubr.msk.bf16.vlgmr.msra.gmra.mrb[0].mxu0 %vm400_vm1, %v1438_v3  ;;  %v1449_v7 = vld [vmem:[%s1523_s8 + $0x60] sm:$0xff]   ;;  %v1451_v9 = vld [vmem:[%s1523_s8 + $0x70] sm:$0xff]   ;;  %v1442_v10 = vld [vmem:[%s1523_s8 + $0x28] sm:$0xff]  }
  0x13   : > { %1350 = vmatprep.mubr.msk.bf16.mxu0 %vm400_vm1, %v1439_v4  ;;  %1370 = vmatprep.mubr.msk.bf16.mxu1 %vm400_vm1, %v1449_v7  ;;  %v1443_v11 = vld [vmem:[%s1523_s8 + $0x30] sm:$0xff]   ;;  %v1452_v12 = vld [vmem:[%s1523_s8 + $0x78] sm:$0xff]   ;;  %v1445_v14 = vld [vmem:[%s1523_s8 + $0x40] sm:$0xff]  }
  0x14   : > { %1371 = vmatmul.mubr.msk.bf16.vlgmr.msra.gmra.mrb[0].mxu1 %vm400_vm1, %v1450_v8  ;;  %v1444_v13 = vld [vmem:[%s1523_s8 + $0x38] sm:$0xff]   ;;  %v1446_v15 = vld [vmem:[%s1523_s8 + $0x48] sm:$0xff]   ;;  %v1447_v16 = vld [vmem:[%s1523_s8 + $0x50] sm:$0xff]  }
  0x15   : > { %1374 = vmatprep.mubr.msk.bf16.mxu1 %vm400_vm1, %v1451_v9  ;;  %v1448_v17 = vld [vmem:[%s1523_s8 + $0x58] sm:$0xff]   ;;  %1412 = vmatpush3.bf16.msra.mxu1 %v1563_v20 }
  0x16   : > { %1413 = vmatprep.subr.bf16.mxu1 %v1463_v21 }
  0x19   : > { %1415 = vmatpush3.bf16.msra.mxu1 %v1574_v24 }
  0x1a   : > { %1351 = vmatmul.mubr.msk.bf16.gmra.mrb[4].mxu0 %vm400_vm1, %v1440_v5  ;;  %1416 = vmatprep.subr.bf16.mxu1 %v1463_v21 }
  0x1b   : > { %1354 = vmatprep.mubr.msk.bf16.mxu0 %vm400_vm1, %v1441_v6 }
  0x1c   : > { %1375 = vmatmul.mubr.msk.bf16.gmra.mrb[4].mxu1 %vm400_vm1, %v1452_v12 }
  0x1d   : > { %1386 = vmatprep.mubr.msk.f32.mxu1 %vm1464_vm2, %v1465_v25 }
  0x22   : > { %1355 = vmatmul.mubr.msk.bf16.gmra.mrb[8].mxu0 %vm400_vm1, %v1442_v10 }
  0x23   : > { %1358 = vmatprep.mubr.msk.bf16.mxu0 %vm400_vm1, %v1443_v11 }
  0x2a   : > { %1359 = vmatmul.mubr.msk.bf16.gmra.mrb[12].mxu0 %vm400_vm1, %v1444_v13 }
  0x2b   : > { %1362 = vmatprep.mubr.msk.bf16.mxu0 %vm400_vm1, %v1445_v14 }
  0x32   : > { %1363 = vmatmul.mubr.msk.bf16.gmra.mrb[16].mxu0 %vm400_vm1, %v1446_v15 }
  0x33   : > { %1366 = vmatprep.mubr.msk.bf16.mxu0 %vm400_vm1, %v1447_v16 }
  0x3a   : > { %1367 = vmatmul.mubr.msk.bf16.gmra.mrb[20].mxu0 %vm400_vm1, %v1448_v17 }
  0xe5   : > { %v1348_v27 = vpop.f32.mrb[0].mxu0 }
  0xe6   : > { %v487_v28 = vpop.f32.mrb[1].mxu0  ;;  %v1586_v29 = vadd.f32 %v1348_v27, %v1583_v26 }
  0xe7   : > { %v1589_v30 = vadd.f32 %v1583_v26, %v487_v28  ;;  %v1349_v31 = vpop.f32.mrb[2].mxu0  ;;  %v1630_v61 = vpop.f32.mrb[0].mxu1 }
  0xe8   : > { %v490_v32 = vpop.f32.mrb[3].mxu0  ;;  %v1594_v34 = vadd.f32 %v1349_v31, %v1583_v26  ;;  %v686_v36 = vmul.f32 %v1586_v29, %v1586_v29  ;;  %v618_v41 = vsel %vm614_vm3, %v1586_v29, 0.0  ;;  %v1635_v1 = vpop.f32.mrb[1].mxu1 }
  0xe9   : > { %v684_v33 = vmul.f32 %v1589_v30, %v1589_v30  ;;  %v1597_v35 = vadd.f32 %v1583_v26, %v490_v32  ;;  %v615_v37 = vsel %vm614_vm3, %v1589_v30, 0.0  ;;  %v1640_v4 = vpop.f32.mrb[2].mxu1 }
  0xea   : > { %v687_v43 = vmul.f32 %v1594_v34, %v1594_v34  ;;  %v719_v49 = vsel %vm614_vm3, %v686_v36, 0.0  ;;  %v620_v50 = vsel %vm614_vm3, %v1594_v34, 0.0  ;;  %v1646_v9 = vpop.f32.mrb[3].mxu1 }
  0xeb   : > { %v616_v38 = vsel %vm614_vm3, %v1597_v35, 0.0  ;;  %v685_v39 = vmul.f32 %v1597_v35, %v1597_v35  ;;  %v716_v42 = vsel %vm614_vm3, %v684_v33, 0.0 }
  0xec   : > { %v617_v40 = vadd.f32 %v616_v38, %v615_v37  ;;  %v721_v57 = vsel %vm614_vm3, %v687_v43, 0.0 }
  0xed   : > { %v717_v44 = vsel %vm614_vm3, %v685_v39, 0.0  ;;  %v1352_v45 = vpop.f32.mrb[4].mxu0 }
  0xee   : > { %v619_v46 = vadd.f32 %v618_v41, %v617_v40  ;;  %v718_v47 = vadd.f32 %v717_v44, %v716_v42  ;;  %v503_v48 = vpop.f32.mrb[5].mxu0  ;;  %v1620_v54 = vadd.f32 %v1352_v45, %v1583_v26 }
  0xef   : > { %v1617_v51 = vadd.f32 %v1583_v26, %v503_v48  ;;  %v1353_v52 = vpop.f32.mrb[6].mxu0  ;;  %v1669_v37 = vpop.f32.mrb[4].mxu1 }
  0xf0   : > { %v720_v53 = vadd.f32 %v719_v49, %v718_v47  ;;  %v621_v55 = vadd.f32 %v620_v50, %v619_v46  ;;  %v506_v56 = vpop.f32.mrb[7].mxu0  ;;  %v1633_v0 = vadd.f32 %v1353_v52, %v1583_v26  ;;  %v690_v5 = vmul.f32 %v1620_v54, %v1620_v54  ;;  %v1675_v41 = vpop.f32.mrb[5].mxu1 }
  0xf1   : > { %v622_v58 = vsel %vm614_vm3, %v1617_v51, 0.0  ;;  %v688_v59 = vmul.f32 %v1617_v51, %v1617_v51  ;;  %v1628_v60 = vadd.f32 %v1583_v26, %v506_v56  ;;  %v626_v10 = vsel %vm614_vm3, %v1620_v54, 0.0  ;;  %v1682_v46 = vpop.f32.mrb[6].mxu1 }
  0xf2   : > { %v623_v62 = vadd.f32 %v622_v58, %v621_v55  ;;  %v722_v63 = vadd.f32 %v721_v57, %v720_v53  ;;  %v691_v12 = vmul.f32 %v1633_v0, %v1633_v0  ;;  %v628_v16 = vsel %vm614_vm3, %v1633_v0, 0.0  ;;  %v1686_v49 = vpop.f32.mrb[7].mxu1 }
  0xf3   : > { %v723_v2 = vsel %vm614_vm3, %v688_v59, 0.0  ;;  %v624_v3 = vsel %vm614_vm3, %v1628_v60, 0.0  ;;  %v689_v8 = vmul.f32 %v1628_v60, %v1628_v60  ;;  %v727_v22 = vsel %vm614_vm3, %v690_v5, 0.0 }
  0xf4   : > { %v724_v6 = vadd.f32 %v723_v2, %v722_v63  ;;  %v625_v7 = vadd.f32 %v624_v3, %v623_v62  ;;  %v729_v38 = vsel %vm614_vm3, %v691_v12, 0.0 }
  0xf5   : > { %v1356_v11 = vpop.f32.mrb[8].mxu0  ;;  %v725_v14 = vsel %vm614_vm3, %v689_v8, 0.0 }
  0xf6   : > { %v627_v13 = vadd.f32 %v626_v10, %v625_v7  ;;  %v519_v15 = vpop.f32.mrb[9].mxu0  ;;  %v726_v17 = vadd.f32 %v725_v14, %v724_v6  ;;  %v1660_v23 = vadd.f32 %v1356_v11, %v1583_v26 }
  0xf7   : > { %v1656_v18 = vadd.f32 %v1583_v26, %v519_v15  ;;  %v1357_v19 = vpop.f32.mrb[10].mxu0 }
  0xf8   : > { %v629_v27 = vadd.f32 %v628_v16, %v627_v13  ;;  %v522_v28 = vpop.f32.mrb[11].mxu0  ;;  %v728_v31 = vadd.f32 %v727_v22, %v726_v17  ;;  %v1673_v40 = vadd.f32 %v1357_v19, %v1583_v26  ;;  %v694_v47 = vmul.f32 %v1660_v23, %v1660_v23 }
  0xf9   : > { %v630_v32 = vsel %vm614_vm3, %v1656_v18, 0.0  ;;  %v692_v33 = vmul.f32 %v1656_v18, %v1656_v18  ;;  %v1667_v36 = vadd.f32 %v1583_v26, %v522_v28  ;;  %v634_v50 = vsel %vm614_vm3, %v1660_v23, 0.0 }
  0xfa   : > { %v631_v39 = vadd.f32 %v630_v32, %v629_v27  ;;  %v730_v42 = vadd.f32 %v729_v38, %v728_v31  ;;  %v695_v56 = vmul.f32 %v1673_v40, %v1673_v40  ;;  %v636_v59 = vsel %vm614_vm3, %v1673_v40, 0.0 }
  0xfb   : > { %v731_v43 = vsel %vm614_vm3, %v692_v33, 0.0  ;;  %v632_v44 = vsel %vm614_vm3, %v1667_v36, 0.0  ;;  %v693_v45 = vmul.f32 %v1667_v36, %v1667_v36  ;;  %v735_v3 = vsel %vm614_vm3, %v694_v47, 0.0 }
  0xfc   : > { %v633_v48 = vadd.f32 %v632_v44, %v631_v39  ;;  %v732_v52 = vadd.f32 %v731_v43, %v730_v42  ;;  %v737_v13 = vsel %vm614_vm3, %v695_v56, 0.0 }
  0xfd   : > { %v733_v53 = vsel %vm614_vm3, %v693_v45, 0.0  ;;  %v1360_v55 = vpop.f32.mrb[12].mxu0 }
  0xfe   : > { %v635_v57 = vadd.f32 %v634_v50, %v633_v48  ;;  %v535_v58 = vpop.f32.mrb[13].mxu0  ;;  %v734_v62 = vadd.f32 %v733_v53, %v732_v52  ;;  %v1700_v5 = vadd.f32 %v1360_v55, %v1583_v26 }
  0xff   : > { %v1696_v63 = vadd.f32 %v1583_v26, %v535_v58  ;;  %v1361_v2 = vpop.f32.mrb[14].mxu0 }
 0x100   : > { %v637_v6 = vadd.f32 %v636_v59, %v635_v57  ;;  %v538_v7 = vpop.f32.mrb[15].mxu0  ;;  %v736_v8 = vadd.f32 %v735_v3, %v734_v62  ;;  %v1711_v15 = vadd.f32 %v1361_v2, %v1583_v26  ;;  %v698_v27 = vmul.f32 %v1700_v5, %v1700_v5 }
 0x101   : > { %v638_v10 = vsel %vm614_vm3, %v1696_v63, 0.0  ;;  %v696_v11 = vmul.f32 %v1696_v63, %v1696_v63  ;;  %v1707_v12 = vadd.f32 %v1583_v26, %v538_v7  ;;  %v642_v31 = vsel %vm614_vm3, %v1700_v5, 0.0 }
 0x102   : > { %v639_v14 = vadd.f32 %v638_v10, %v637_v6  ;;  %v738_v16 = vadd.f32 %v737_v13, %v736_v8  ;;  %v699_v39 = vmul.f32 %v1711_v15, %v1711_v15  ;;  %v644_v44 = vsel %vm614_vm3, %v1711_v15, 0.0 }
 0x103   : > { %v739_v17 = vsel %vm614_vm3, %v696_v11, 0.0  ;;  %v640_v19 = vsel %vm614_vm3, %v1707_v12, 0.0  ;;  %v697_v22 = vmul.f32 %v1707_v12, %v1707_v12  ;;  %v743_v50 = vsel %vm614_vm3, %v698_v27, 0.0 }
 0x104   : > { %v641_v28 = vadd.f32 %v640_v19, %v639_v14  ;;  %v740_v32 = vadd.f32 %v739_v17, %v738_v16  ;;  %v745_v62 = vsel %vm614_vm3, %v699_v39, 0.0 }
 0x105   : > { %v741_v33 = vsel %vm614_vm3, %v697_v22, 0.0  ;;  %v1364_v38 = vpop.f32.mrb[16].mxu0 }
 0x106   : > { %v643_v42 = vadd.f32 %v642_v31, %v641_v28  ;;  %v551_v43 = vpop.f32.mrb[17].mxu0  ;;  %v742_v45 = vadd.f32 %v741_v33, %v740_v32  ;;  %v1732_v52 = vadd.f32 %v1364_v38, %v1583_v26 }
 0x107   : > { %v1728_v47 = vadd.f32 %v1583_v26, %v551_v43  ;;  %v1365_v48 = vpop.f32.mrb[18].mxu0 }
 0x108   : > { %v645_v53 = vadd.f32 %v644_v44, %v643_v42  ;;  %v554_v55 = vpop.f32.mrb[19].mxu0  ;;  %v744_v56 = vadd.f32 %v743_v50, %v742_v45  ;;  %v1743_v3 = vadd.f32 %v1365_v48, %v1583_v26  ;;  %v702_v11 = vmul.f32 %v1732_v52, %v1732_v52 }
 0x109   : > { %v646_v57 = vsel %vm614_vm3, %v1728_v47, 0.0  ;;  %v700_v58 = vmul.f32 %v1728_v47, %v1728_v47  ;;  %v1739_v59 = vadd.f32 %v1583_v26, %v554_v55  ;;  %v650_v14 = vsel %vm614_vm3, %v1732_v52, 0.0 }
 0x10a   : > { %v647_v2 = vadd.f32 %v646_v57, %v645_v53  ;;  %v746_v6 = vadd.f32 %v745_v62, %v744_v56  ;;  %v703_v22 = vmul.f32 %v1743_v3, %v1743_v3  ;;  %v652_v31 = vsel %vm614_vm3, %v1743_v3, 0.0 }
 0x10b   : > { %v747_v7 = vsel %vm614_vm3, %v700_v58, 0.0  ;;  %v648_v8 = vsel %vm614_vm3, %v1739_v59, 0.0  ;;  %v701_v10 = vmul.f32 %v1739_v59, %v1739_v59  ;;  %v751_v39 = vsel %vm614_vm3, %v702_v11, 0.0 }
 0x10c   : > { %v649_v13 = vadd.f32 %v648_v8, %v647_v2  ;;  %v748_v16 = vadd.f32 %v747_v7, %v746_v6  ;;  %v1768_v45 = vadd.f32 %v1583_v26, %v1635_v1  ;;  %v753_v56 = vsel %vm614_vm3, %v703_v22, 0.0 }
 0x10d   : > { %v749_v17 = vsel %vm614_vm3, %v701_v10, 0.0  ;;  %v1368_v19 = vpop.f32.mrb[20].mxu0 }
 0x10e   : > { %v651_v27 = vadd.f32 %v650_v14, %v649_v13  ;;  %v567_v28 = vpop.f32.mrb[21].mxu0  ;;  %v750_v32 = vadd.f32 %v749_v17, %v748_v16  ;;  %v1764_v42 = vadd.f32 %v1368_v19, %v1583_v26  ;;  %v708_v14 = vmul.f32 %v1768_v45, %v1768_v45 }
 0x10f   : > { %v1760_v33 = vadd.f32 %v1583_v26, %v567_v28  ;;  %v1369_v38 = vpop.f32.mrb[22].mxu0  ;;  %v1797_v19 = vadd.f32 %v1583_v26, %v1646_v9  ;;  %v662_v28 = vsel %vm614_vm3, %v1768_v45, 0.0  ;;  %v1811_v9 = vadd.f32 %v1640_v4, %v1583_v26 }
 0x110   : > { %v653_v43 = vadd.f32 %v652_v31, %v651_v27  ;;  %v570_v44 = vpop.f32.mrb[23].mxu0  ;;  %v752_v48 = vadd.f32 %v751_v39, %v750_v32  ;;  %v1779_v58 = vadd.f32 %v1369_v38, %v1583_v26  ;;  %v706_v7 = vmul.f32 %v1764_v42, %v1764_v42 }
 0x111   : > { %v654_v50 = vsel %vm614_vm3, %v1760_v33, 0.0  ;;  %v704_v53 = vmul.f32 %v1760_v33, %v1760_v33  ;;  %v1775_v55 = vadd.f32 %v1583_v26, %v570_v44  ;;  %v658_v10 = vsel %vm614_vm3, %v1764_v42, 0.0 }
 0x112   : > { %v655_v57 = vadd.f32 %v654_v50, %v653_v43  ;;  %v754_v62 = vadd.f32 %v753_v56, %v752_v48  ;;  %v707_v16 = vmul.f32 %v1779_v58, %v1779_v58  ;;  %v660_v22 = vsel %vm614_vm3, %v1779_v58, 0.0 }
 0x113   : > { %v755_v1 = vsel %vm614_vm3, %v704_v53, 0.0  ;;  %v656_v2 = vsel %vm614_vm3, %v1775_v55, 0.0  ;;  %v705_v6 = vmul.f32 %v1775_v55, %v1775_v55  ;;  %v759_v31 = vsel %vm614_vm3, %v706_v7, 0.0 }
 0x114   : > { %v657_v8 = vadd.f32 %v656_v2, %v655_v57  ;;  %v756_v11 = vadd.f32 %v755_v1, %v754_v62  ;;  %v1806_v32 = vadd.f32 %v1630_v61, %v1583_v26  ;;  %v763_v43 = vsel %vm614_vm3, %v708_v14, 0.0 }
 0x115   : > { %v757_v13 = vsel %vm614_vm3, %v705_v6, 0.0  ;;  %v761_v44 = vsel %vm614_vm3, %v707_v16, 0.0  ;;  %v709_v50 = vmul.f32 %v1797_v19, %v1797_v19  ;;  %v1818_v53 = vadd.f32 %v1583_v26, %v1675_v41 }
 0x116   : > { %v659_v17 = vadd.f32 %v658_v10, %v657_v8  ;;  %v758_v27 = vadd.f32 %v757_v13, %v756_v11  ;;  %v664_v56 = vsel %vm614_vm3, %v1797_v19, 0.0  ;;  %v710_v57 = vmul.f32 %v1806_v32, %v1806_v32 }
 0x117   : > { %v666_v4 = vsel %vm614_vm3, %v1806_v32, 0.0  ;;  %v711_v2 = vmul.f32 %v1811_v9, %v1811_v9  ;;  %v765_v7 = vsel %vm614_vm3, %v709_v50, 0.0  ;;  %v712_v41 = vmul.f32 %v1818_v53, %v1818_v53 }
 0x118   : > { %v661_v38 = vadd.f32 %v660_v22, %v659_v17  ;;  %v760_v39 = vadd.f32 %v759_v31, %v758_v27  ;;  %v1833_v8 = vadd.f32 %v1583_v26, %v1686_v49  ;;  %v668_v10 = vsel %vm614_vm3, %v1811_v9, 0.0 }
 0x119   : > { %v670_v13 = vsel %vm614_vm3, %v1818_v53, 0.0  ;;  %v767_v14 = vsel %vm614_vm3, %v710_v57, 0.0  ;;  %v1842_v16 = vadd.f32 %v1669_v37, %v1583_v26  ;;  %v769_v22 = vsel %vm614_vm3, %v711_v2, 0.0 }
 0x11a   : > { %v663_v48 = vadd.f32 %v662_v28, %v661_v38  ;;  %v762_v61 = vadd.f32 %v761_v44, %v760_v39  ;;  %v771_v49 = vsel %vm614_vm3, %v712_v41, 0.0  ;;  %v1848_v31 = vadd.f32 %v1682_v46, %v1583_v26 }
 0x11b   : > { %v713_v38 = vmul.f32 %v1833_v8, %v1833_v8  ;;  %v714_v37 = vmul.f32 %v1842_v16, %v1842_v16 }
 0x11c   : > { %v665_v62 = vadd.f32 %v664_v56, %v663_v48  ;;  %v764_v1 = vadd.f32 %v763_v43, %v762_v61  ;;  %v672_v43 = vsel %vm614_vm3, %v1833_v8, 0.0  ;;  %v674_v48 = vsel %vm614_vm3, %v1842_v16, 0.0 }
 0x11d   : > { %v715_v61 = vmul.f32 %v1848_v31, %v1848_v31  ;;  %v773_v46 = vsel %vm614_vm3, %v713_v38, 0.0  ;;  %v676_v56 = vsel %vm614_vm3, %v1848_v31, 0.0 }
 0x11e   : > { %v667_v6 = vadd.f32 %v666_v4, %v665_v62  ;;  %v766_v11 = vadd.f32 %v765_v7, %v764_v1  ;;  %v775_v62 = vsel %vm614_vm3, %v714_v37, 0.0 }
 0x11f   : > { %v777_v2 = vsel %vm614_vm3, %v715_v61, 0.0 }
 0x120   : > { %v669_v17 = vadd.f32 %v668_v10, %v667_v6  ;;  %v768_v27 = vadd.f32 %v767_v14, %v766_v11 }
 0x122   : > { %v671_v28 = vadd.f32 %v670_v13, %v669_v17  ;;  %v770_v39 = vadd.f32 %v769_v22, %v768_v27 }
 0x124   : > { %v673_v44 = vadd.f32 %v672_v43, %v671_v28  ;;  %v772_v50 = vadd.f32 %v771_v49, %v770_v39 }
 0x126   : > { %v675_v26 = vadd.f32 %v674_v48, %v673_v44  ;;  %v774_v57 = vadd.f32 %v773_v46, %v772_v50 }
 0x128   : > { %v677_v4 = vadd.f32 %v676_v56, %v675_v26  ;;  %v776_v1 = vadd.f32 %v775_v62, %v774_v57  ;;  %v1099_v62 = vlaneseq }
 0x12a   : > { %v678_v6 = vrot.slane %v677_v4, 4  ;;  %v778_v7 = vadd.f32 %v777_v2, %v776_v1  ;;  %v1093_v1 = vld [vmem:[%s1999_s5] sm:$0x1] }
 0x12c   : > { %v679_v41 = vadd.f32 %v678_v6, %v677_v4  ;;  %v779_v10 = vrot.slane %v778_v7, 4  ;;  %v1100_v4 = vshrl.u32 %v1099_v62, 7 }
 0x12e   : > { %v680_v11 = vrot.slane %v679_v41, 2  ;;  %v780_v13 = vadd.f32 %v779_v10, %v778_v7 }
 0x130   : > { %v681_v14 = vadd.f32 %v680_v11, %v679_v41  ;;  %v781_v17 = vrot.slane %v780_v13, 2  ;;  %v1095_v41 = vld [vmem:[%s2000_s6] sm:$0x1] }
 0x132   : > { %v682_v22 = vrot.slane %v681_v14, 1  ;;  %v782_v28 = vadd.f32 %v781_v17, %v780_v13 }
 0x134   : > { %v683_v27 = vadd.f32 %v682_v22, %v681_v14  ;;  %v783_v49 = vrot.slane %v782_v28, 1 }
 0x136   : > { %1387 = vmatmul.mubr.msk.f32.vlgmr.msra.gmra.mrb[8].mxu1 %vm614_vm3, %v683_v27  ;;  %v784_v38 = vadd.f32 %v783_v49, %v782_v28 }
 0x137   : > { %1418 = vmatpush3.bf16.msra.mxu1 %v1563_v20  ;;  %1397 = vmatprep.mubr.msk.f32.mxu1 %vm1464_vm2, %v1465_v25  ;;  %v942_v20 = vld [vmem:[%s1998_s4] sm:$0xf] }
 0x138   : > { %1419 = vmatprep.subr.bf16.mxu1 %v1463_v21 }
 0x13b   : > { %1421 = vmatpush3.bf16.msra.mxu1 %v1574_v24 }
 0x13c   : > { %1400 = vmatprep.subr.mxu1 %v1465_v25 }
 0x13e   : > { %1398 = vmatmul.mubr.msk.f32.vlgmr.msra.gmra.mrb[10].mxu1 %vm614_vm3, %v784_v38 }
 0x13f   : > { %1402 = vmatprep.mubr.msk.f32.mxu1 %vm1464_vm2, %v1465_v25  ;;  %1401 = vmatpush3.msk.msra.mxu1 %vm946_vm4, %v942_v20 }
 0x140   : > { %1405 = vmatprep.subr.mxu1 %v1465_v25 }
 0x209   : > { %v858_v21 = vpop.f32.mrb[8].mxu1 }
 0x20a   : > { %v862_v39 = vmul.f32 0.00390625, %v858_v21  ;;  %v1388_v43 = vpop.f32.mrb[9].mxu1 }
 0x20c   : > { %1403 = vmatmul.mubr.msk.f32.vlgmr.msra.gmra.mrb[12].mxu1 %vm400_vm1, %v862_v39  ;;  %v937_v37 = vmul.f32 %v862_v39, %v862_v39 }
 0x20d   : > { %1406 = vmatpush3.msk.msra.mxu1 %vm946_vm4, %v942_v20  ;;  %1407 = vmatprep.mubr.msk.f32.mxu1 %vm1464_vm2, %v1465_v25  ;;  %v1101_v25 = vsub.s32 0, %v1100_v4 }
 0x211   : > { %v932_v24 = vpop.f32.mrb[10].mxu1 }
 0x212   : > { %v936_v44 = vmul.f32 0.00390625, %v932_v24  ;;  %v1399_v48 = vpop.f32.mrb[11].mxu1 }
 0x214   : > { %v938_v50 = vsub.f32 %v936_v44, %v937_v37 }
 0x216   : > { %v939_v61 = vmax.f32 %v938_v50, 0.0 }
 0x218   : > { %v940_v26 = vadd.f32 1e-05, %v939_v61 }
 0x21a   : > { %1453 = vrsqrt.f32 %v940_v26 }
 0x224   : > { %v1454_v46 = vpop.eup %1453 }
 0x225   : > { %1408 = vmatmul.mubr.msk.f32.vlgmr.msra.gmra.mrb[14].mxu1 %vm400_vm1, %v1454_v46 }
 0x2df   : > { %v1016_v56 = vpop.f32.mrb[12].mxu1 }
 0x2e0   : > { %v1404_v57 = vpop.f32.mrb[13].mxu1 }
 0x2f8   : > { %v1089_v2 = vpop.f32.mrb[14].mxu1 }
 0x2f9   : > { %v1094_v6 = vmul.f32 %v1093_v1, %v1089_v2  ;;  %v1409_v7 = vpop.f32.mrb[15].mxu1 }
 0x2fb   : > { %v1096_v10 = vmul.f32 %v1094_v6, %v1016_v56  ;;  %v1102_v11 = vrot.slane %v1094_v6, %v1101_v25 }
 0x2fd   : > { %v1097_v13 = vsub.f32 %v1095_v41, %v1096_v10  ;;  %v1104_v14 = vmul.f32 %v1102_v11, %v1589_v30  ;;  %v1105_v17 = vmul.f32 %v1102_v11, %v1597_v35  ;;  %v1106_v22 = vmul.f32 %v1102_v11, %v1586_v29 }
 0x2fe   : > { %v1107_v27 = vmul.f32 %v1102_v11, %v1594_v34  ;;  %v1108_v28 = vmul.f32 %v1102_v11, %v1617_v51  ;;  %v1109_v49 = vmul.f32 %v1102_v11, %v1628_v60  ;;  %v1110_v38 = vmul.f32 %v1102_v11, %v1620_v54 }
 0x2ff   : > { %v1111_v20 = vmul.f32 %v1102_v11, %v1633_v0  ;;  %v1112_v21 = vmul.f32 %v1102_v11, %v1656_v18  ;;  %v1113_v39 = vmul.f32 %v1102_v11, %v1667_v36  ;;  %v1114_v30 = vmul.f32 %v1102_v11, %v1660_v23 }
 0x300   : > { %v1115_v35 = vmul.f32 %v1102_v11, %v1673_v40  ;;  %v1116_v29 = vmul.f32 %v1102_v11, %v1696_v63  ;;  %v1117_v34 = vmul.f32 %v1102_v11, %v1707_v12  ;;  %v1118_v51 = vmul.f32 %v1102_v11, %v1700_v5 }
 0x301   : > { %v1119_v60 = vmul.f32 %v1102_v11, %v1711_v15  ;;  %v1120_v54 = vmul.f32 %v1102_v11, %v1728_v47  ;;  %v1121_v0 = vmul.f32 %v1102_v11, %v1739_v59  ;;  %v1122_v18 = vmul.f32 %v1102_v11, %v1732_v52 }
 0x302   : > { %v1123_v36 = vmul.f32 %v1102_v11, %v1743_v3  ;;  %v1124_v23 = vmul.f32 %v1102_v11, %v1760_v33  ;;  %v1125_v40 = vmul.f32 %v1102_v11, %v1775_v55  ;;  %v1126_v63 = vmul.f32 %v1102_v11, %v1764_v42 }
 0x303   : > { %v1127_v12 = vmul.f32 %v1102_v11, %v1779_v58  ;;  %v1128_v5 = vmul.f32 %v1102_v11, %v1768_v45  ;;  %v1129_v15 = vmul.f32 %v1102_v11, %v1797_v19  ;;  %v1130_v47 = vmul.f32 %v1102_v11, %v1806_v32 }
 0x304   : > { %v1131_v59 = vmul.f32 %v1102_v11, %v1811_v9  ;;  %v1140_v43 = vrot.slane %v1097_v13, %v1101_v25  ;;  %v1132_v52 = vmul.f32 %v1102_v11, %v1818_v53  ;;  %v1133_v3 = vmul.f32 %v1102_v11, %v1833_v8 }
 0x305   : > { %v1134_v33 = vmul.f32 %v1102_v11, %v1842_v16  ;;  %v1135_v42 = vmul.f32 %v1102_v11, %v1848_v31 }
 0x306   : > { %v1142_v45 = vadd.f32 %v1140_v43, %v1104_v14  ;;  %v1143_v55 = vadd.f32 %v1140_v43, %v1105_v17  ;;  %v1144_v58 = vadd.f32 %v1140_v43, %v1106_v22  ;;  %v1145_v19 = vadd.f32 %v1140_v43, %v1107_v27 }
 0x307   : > { %v1146_v32 = vadd.f32 %v1140_v43, %v1108_v28  ;;  %v1147_v9 = vadd.f32 %v1140_v43, %v1109_v49  ;;  %v1148_v24 = vadd.f32 %v1140_v43, %v1110_v38  ;;  %v1149_v53 = vadd.f32 %v1140_v43, %v1111_v20 }
 0x308   : > { %v1150_v8 = vadd.f32 %v1140_v43, %v1112_v21  ;;  %v1151_v37 = vadd.f32 %v1140_v43, %v1113_v39  ;;  %v1152_v44 = vadd.f32 %v1140_v43, %v1114_v30  ;;  %v1153_v16 = vadd.f32 %v1140_v43, %v1115_v35  ;;  %1174 = vst.msk [vmem:[%s1921_s29] sm:$0xff] %vm614_vm3, %v1142_v45 }
 0x309   : > { %1175 = vst.msk [vmem:[%s1921_s29 + $0x8] sm:$0xff] %vm614_vm3, %v1143_v55  ;;  %1176 = vst.msk [vmem:[%s1921_s29 + $0x10] sm:$0xff] %vm614_vm3, %v1144_v58  ;;  %v1154_v31 = vadd.f32 %v1140_v43, %v1116_v29  ;;  %v1155_v48 = vadd.f32 %v1140_v43, %v1117_v34  ;;  %v1156_v50 = vadd.f32 %v1140_v43, %v1118_v51 }
 0x30a   : > { %1177 = vst.msk [vmem:[%s1921_s29 + $0x18] sm:$0xff] %vm614_vm3, %v1145_v19  ;;  %v1157_v61 = vadd.f32 %v1140_v43, %v1119_v60  ;;  %1178 = vst.msk [vmem:[%s1921_s29 + $0x20] sm:$0xff] %vm614_vm3, %v1146_v32  ;;  %v1158_v26 = vadd.f32 %v1140_v43, %v1120_v54  ;;  %v1159_v46 = vadd.f32 %v1140_v43, %v1121_v0 }
 0x30b   : > { %1179 = vst.msk [vmem:[%s1921_s29 + $0x28] sm:$0xff] %vm614_vm3, %v1147_v9  ;;  %1180 = vst.msk [vmem:[%s1921_s29 + $0x30] sm:$0xff] %vm614_vm3, %v1148_v24  ;;  %v1160_v56 = vadd.f32 %v1140_v43, %v1122_v18  ;;  %v1161_v57 = vadd.f32 %v1140_v43, %v1123_v36  ;;  %v1162_v62 = vadd.f32 %v1140_v43, %v1124_v23 }
 0x30c   : > { %1181 = vst.msk [vmem:[%s1921_s29 + $0x38] sm:$0xff] %vm614_vm3, %v1149_v53  ;;  %1182 = vst.msk [vmem:[%s1921_s29 + $0x40] sm:$0xff] %vm614_vm3, %v1150_v8  ;;  %v1163_v4 = vadd.f32 %v1140_v43, %v1125_v40  ;;  %v1164_v1 = vadd.f32 %v1140_v43, %v1126_v63  ;;  %v1165_v25 = vadd.f32 %v1140_v43, %v1127_v12 }
 0x30d   : > { %1183 = vst.msk [vmem:[%s1921_s29 + $0x48] sm:$0xff] %vm614_vm3, %v1151_v37  ;;  %1184 = vst.msk [vmem:[%s1921_s29 + $0x50] sm:$0xff] %vm614_vm3, %v1152_v44  ;;  %v1166_v2 = vadd.f32 %v1140_v43, %v1128_v5  ;;  %v1167_v6 = vadd.f32 %v1140_v43, %v1129_v15  ;;  %v1168_v7 = vadd.f32 %v1140_v43, %v1130_v47 }
 0x30e   : > { %1185 = vst.msk [vmem:[%s1921_s29 + $0x58] sm:$0xff] %vm614_vm3, %v1153_v16  ;;  %1186 = vst.msk [vmem:[%s1921_s29 + $0x60] sm:$0xff] %vm614_vm3, %v1154_v31  ;;  %v1169_v41 = vadd.f32 %v1140_v43, %v1131_v59  ;;  %v1170_v10 = vadd.f32 %v1140_v43, %v1132_v52  ;;  %v1171_v11 = vadd.f32 %v1140_v43, %v1133_v3 }
 0x30f   : > { %1187 = vst.msk [vmem:[%s1921_s29 + $0x68] sm:$0xff] %vm614_vm3, %v1155_v48  ;;  %1188 = vst.msk [vmem:[%s1921_s29 + $0x70] sm:$0xff] %vm614_vm3, %v1156_v50  ;;  %v1172_v13 = vadd.f32 %v1140_v43, %v1134_v33  ;;  %v1173_v14 = vadd.f32 %v1140_v43, %v1135_v42 }
 0x310   : > { %1189 = vst.msk [vmem:[%s1921_s29 + $0x78] sm:$0xff] %vm614_vm3, %v1157_v61  ;;  %1190 = vst.msk [vmem:[%s1921_s29 + $0x80] sm:$0xff] %vm614_vm3, %v1158_v26 }
 0x311   : > { %1191 = vst.msk [vmem:[%s1921_s29 + $0x88] sm:$0xff] %vm614_vm3, %v1159_v46  ;;  %1192 = vst.msk [vmem:[%s1921_s29 + $0x90] sm:$0xff] %vm614_vm3, %v1160_v56 }
 0x312   : > { %1193 = vst.msk [vmem:[%s1921_s29 + $0x98] sm:$0xff] %vm614_vm3, %v1161_v57  ;;  %1194 = vst.msk [vmem:[%s1921_s29 + $0xa0] sm:$0xff] %vm614_vm3, %v1162_v62 }
 0x313   : > { %1195 = vst.msk [vmem:[%s1921_s29 + $0xa8] sm:$0xff] %vm614_vm3, %v1163_v4  ;;  %1196 = vst.msk [vmem:[%s1921_s29 + $0xb0] sm:$0xff] %vm614_vm3, %v1164_v1 }
 0x314   : > { %1197 = vst.msk [vmem:[%s1921_s29 + $0xb8] sm:$0xff] %vm614_vm3, %v1165_v25  ;;  %1198 = vst.msk [vmem:[%s1921_s29 + $0xc0] sm:$0xff] %vm614_vm3, %v1166_v2 }
 0x315   : > { %1199 = vst.msk [vmem:[%s1921_s29 + $0xc8] sm:$0xff] %vm614_vm3, %v1167_v6  ;;  %1200 = vst.msk [vmem:[%s1921_s29 + $0xd0] sm:$0xff] %vm614_vm3, %v1168_v7 }
 0x316   : > { %1201 = vst.msk [vmem:[%s1921_s29 + $0xd8] sm:$0xff] %vm614_vm3, %v1169_v41  ;;  %1202 = vst.msk [vmem:[%s1921_s29 + $0xe0] sm:$0xff] %vm614_vm3, %v1170_v10 }
 0x317   : > { %1203 = vst.msk [vmem:[%s1921_s29 + $0xe8] sm:$0xff] %vm614_vm3, %v1171_v11  ;;  %1204 = vst.msk [vmem:[%s1921_s29 + $0xf0] sm:$0xff] %vm614_vm3, %v1172_v13 }
 0x318   : > { %1205 = vst.msk [vmem:[%s1921_s29 + $0xf8] sm:$0xff] %vm614_vm3, %v1173_v14 }
 0x319 PF: > { %s17_s24 = sadd.s32 1, %s1461_s24  }
 0x31a   : > { %p14_p4 = scmp.ge.s32.totalorder %s17_s24, 4  }
 0x31c   :  { %16 = sbr.rel (!%p14_p4) target bundleno = 1 (0x1), region = 78 }

</bundles_post_ra>
